<compile_context>
chip_gen: v5e
topology: v5e:2x2
jax: 0.10.0
libtpu: 0.0.40
codegen_flags: <defaults>
</compile_context>

<pallas_src>
import functools

import numpy as np
import jax
import jax.numpy as jnp
from jax import lax
from jax.experimental import pallas as pl
from jax.experimental.pallas import tpu as pltpu

FILT_1D = np.array([1.0, 2.0, 1.0], dtype=np.float64)  # binomial taps (PyTorch buffer)


def _reflect_index(idx: int, n: int) -> int:
    # F.pad(..., mode='reflect') with pad=1: index -1 -> 1, index n -> n-2
    if idx < 0:
        idx = -idx
    if idx >= n:
        idx = 2 * n - 2 - idx
    return idx


def _build_w_matrix(W: int):
    """(W, Wo) matrix folding reflect-pad(1) + [1,2,1]/4 blur + stride-2 along width."""
    f1 = FILT_1D / FILT_1D.sum()  # [0.25, 0.5, 0.25]
    Wo = (W - 1) // 2 + 1
    B = np.zeros((W, Wo), dtype=np.float64)
    for j in range(Wo):
        for b in range(3):
            B[_reflect_index(2 * j + b - 1, W), j] += f1[b]
    return B, Wo


def _choose_cb(C: int, Ho: int, row_bytes_per_channel: int, budget_bytes: int) -> int:
    """Largest channel-block that divides C, fits the byte budget and keeps the
    block's sublane dim (Cb*Ho) tile-friendly (multiple of 8, or the full C)."""
    cap = max(1, min(C, budget_bytes // max(row_bytes_per_channel, 1)))
    for cb in range(cap, 0, -1):
        if C % cb:
            continue
        if cb == C or (cb * Ho) % 8 == 0:
            return cb
    return C  # fallback: whole channel dim (block == full array dim is always legal)


def _downsample_kernel(x_ref, b_ref, o_ref, shift_ref, *, ho: int, w: int):
    # x_ref : (R, 2W) with R = Cb*Ho.  Row g = (channel c, out-row i) holds
    #         [ input row 2i | input row 2i+1 ] of channel c on the lane axis.
    # b_ref : (W, Wo) dense width-direction blur/stride matrix.
    # o_ref : (R, Wo)
    blk = x_ref[...]
    R = blk.shape[0]
    even = blk[:, :w]   # input rows 2i   (centre tap, weight 1/2)
    odd = blk[:, w:]    # input rows 2i+1 (right tap,  weight 1/4)

    # Left tap = input row 2i-1 = previous output-row's odd row.  Build the
    # one-row sublane shift by staging `odd` through VMEM: aligned store at
    # sublane offset 8, read back at offset 7  ->  shifted[g] = odd[g-1].
    shift_ref[pl.ds(8, R), :] = odd
    shift_ref[pl.ds(7, 1), :] = odd[0:1, :]
    shifted = shift_ref[pl.ds(7, R), :]

    # First output row of every channel uses the reflected row 1 (= its own odd
    # row); this select also stops the shift from leaking across channels.
    row = lax.broadcasted_iota(jnp.int32, (R, 1), 0)
    left = jnp.where(row % ho == 0, odd, shifted)

    # H-direction blur + stride-2 on the VPU (taps 1/4, 1/2, 1/4 are exact).
    s = 0.25 * left + 0.5 * even + 0.25 * odd            # (R, W), x.dtype

    # W-direction blur + reflect + stride-2 as one big MXU matmul, f32 accumulate.
    y = jnp.dot(s, b_ref[...], preferred_element_type=jnp.float32)  # (R, Wo)
    o_ref[...] = y.astype(o_ref.dtype)


def downsample(x, *, channel_block_budget_bytes: int = 4 << 20):
    """Equivalent of AntiAliasDownsampleLayer(filt_size=3, stride=2).forward(x), NCHW."""
    N, C, H, W = x.shape
    assert H >= 2 and W >= 2, "reflect padding of 1 requires H >= 2 and W >= 2"

    if H % 2:
        # Odd heights: append one reflected row so rows pair up evenly; the appended
        # row (index H-2) is exactly the reflect-pad value the last output row needs.
        x = jnp.concatenate([x, x[:, :, H - 2:H - 1, :]], axis=2)
        H = H + 1
    Ho = H // 2

    B_np, Wo = _build_w_matrix(W)
    Bmat = jnp.asarray(B_np, dtype=x.dtype)  # taps (k/16 sums) are exact in bf16 too

    itemsize = jnp.dtype(x.dtype).itemsize
    Cb = _choose_cb(C, Ho, Ho * 2 * W * itemsize, channel_block_budget_bytes)
    Cg = C // Cb
    R = Cb * Ho

    # Free (layout-preserving) view: row (c, i) = [x[c, 2i, :] | x[c, 2i+1, :]].
    xv = x.reshape(N, C * Ho, 2 * W)

    in_bytes = R * 2 * W * itemsize
    out_bytes = R * Wo * itemsize
    scratch_bytes = (R + 8) * W * itemsize
    est = 2 * (in_bytes + out_bytes) + scratch_bytes + int(Bmat.size) * itemsize
    vmem_limit = int(min(max(2 * est, 32 * 1024 * 1024), 64 * 1024 * 1024))

    cost = pl.CostEstimate(
        flops=2 * N * C * Ho * W * Wo + 6 * N * C * Ho * W,
        transcendentals=0,
        bytes_accessed=(N * C * H * W + N * C * Ho * Wo) * itemsize,
    )

    kernel = functools.partial(_downsample_kernel, ho=Ho, w=W)
    # TODO(synk): output last dim is Wo (< 128) -> masked stores; a fully lane-dense
    # output layout would need an extra transpose pass outside the kernel.
    y = pl.pallas_call(
        kernel,
        out_shape=jax.ShapeDtypeStruct((N, C * Ho, Wo), x.dtype),
        grid=(N, Cg),
        in_specs=[
            pl.BlockSpec((None, R, 2 * W), lambda n, g: (n, g, 0)),
            pl.BlockSpec((W, Wo), lambda n, g: (0, 0)),
        ],
        out_specs=pl.BlockSpec((None, R, Wo), lambda n, g: (n, g, 0)),
        scratch_shapes=[pltpu.VMEM((R + 8, W), x.dtype)],
        compiler_params=pltpu.CompilerParams(
            dimension_semantics=("parallel", "parallel"),
            vmem_limit_bytes=vmem_limit,
        ),
        cost_estimate=cost,
    )(xv, Bmat)
    return y.reshape(N, C, Ho, Wo)


def _reference(x):
    """Pure-JAX reference matching the PyTorch forward exactly."""
    N, C, H, W = x.shape
    f1 = jnp.asarray(FILT_1D, dtype=x.dtype)
    filt = f1[:, None] * f1[None, :]
    filt = filt / jnp.sum(filt)
    filt = jnp.broadcast_to(filt[None, None, :, :], (C, 1, 3, 3))
    x_pad = jnp.pad(x, ((0, 0), (0, 0), (1, 1), (1, 1)), mode="reflect")
    return jax.lax.conv_general_dilated(
        x_pad, filt, window_strides=(2, 2), padding="VALID",
        dimension_numbers=("NCHW", "OIHW", "NCHW"),
        feature_group_count=C)


if __name__ == "__main__":
    key = jax.random.PRNGKey(0)

    # Primary check (shape implied by the module / previous harness).
    x = jax.random.normal(key, (2, 4, 16, 16), dtype=jnp.float32)
    y = downsample(x)
    jax.block_until_ready(y)
    y_ref = _reference(x)
    assert y.shape == y_ref.shape == (2, 4, 8, 8), (y.shape, y_ref.shape)
    assert jnp.allclose(y, y_ref, atol=1e-5, rtol=1e-5), (
        float(jnp.max(jnp.abs(y - y_ref))))

    # Secondary check: odd height / odd width path.
    x2 = jax.random.normal(jax.random.PRNGKey(1), (1, 3, 15, 10), dtype=jnp.float32)
    y2 = downsample(x2)
    jax.block_until_ready(y2)
    y2_ref = _reference(x2)
    assert y2.shape == y2_ref.shape == (1, 3, 8, 5), (y2.shape, y2_ref.shape)
    assert jnp.allclose(y2, y2_ref, atol=1e-5, rtol=1e-5), (
        float(jnp.max(jnp.abs(y2 - y2_ref))))

    print("KERNEL_OK")
</pallas_src>

<mosaic_0001>
module attributes {stable_mosaic.version = 11 : i64} {
  func.func @_downsample_kernel(%arg0: i32, %arg1: i32, %arg2: memref<1x32x32xf32, #tpu.memory_space<vmem>>, %arg3: memref<16x8xf32, #tpu.memory_space<vmem>>, %arg4: memref<1x32x8xf32, #tpu.memory_space<vmem>>, %arg5: memref<40x16xf32, #tpu.memory_space<vmem>>) attributes {dimension_semantics = [#tpu.dimension_semantics<parallel>, #tpu.dimension_semantics<parallel>], iteration_bounds = array<i64: 2, 1>, scalar_prefetch = 0 : i64, scratch_operands = 1 : i64, tpu.core_type = #tpu.core_type<tc>, window_params = [{transform_indices = @transform_0, window_bounds = array<i64: 1, 32, 32>}, {pipeline_mode = #tpu.pipeline_mode<synchronous>, transform_indices = @transform_1, window_bounds = array<i64: 16, 8>}, {transform_indices = @transform_2, window_bounds = array<i64: 1, 32, 8>}]} {
    %c0 = arith.constant 0 : index
    %c0_0 = arith.constant 0 : index
    %c0_1 = arith.constant 0 : index
    %0 = vector.load %arg2[%c0, %c0_0, %c0_1] : memref<1x32x32xf32, #tpu.memory_space<vmem>>, vector<1x32x32xf32>
    %1 = vector.shape_cast %0 : vector<1x32x32xf32> to vector<32x32xf32>
    %2 = vector.extract_strided_slice %1 {offsets = [0, 0], sizes = [32, 16], strides = [1, 1]} : vector<32x32xf32> to vector<32x16xf32>
    %3 = vector.extract_strided_slice %1 {offsets = [0, 16], sizes = [32, 16], strides = [1, 1]} : vector<32x32xf32> to vector<32x16xf32>
    %c8 = arith.constant 8 : index
    %c0_2 = arith.constant 0 : index
    %4 = vector.load %arg5[%c8, %c0_2] : memref<40x16xf32, #tpu.memory_space<vmem>>, vector<32x16xf32>
    tpu.vector_store %arg5[%c8, %c0_2], %3 {strides = array<i32>} : memref<40x16xf32, #tpu.memory_space<vmem>>, vector<32x16xf32>,
    %5 = vector.extract_strided_slice %3 {offsets = [0, 0], sizes = [1, 16], strides = [1, 1]} : vector<32x16xf32> to vector<1x16xf32>
    %c7 = arith.constant 7 : index
    %c0_3 = arith.constant 0 : index
    %6 = vector.load %arg5[%c7, %c0_3] : memref<40x16xf32, #tpu.memory_space<vmem>>, vector<1x16xf32>
    tpu.vector_store %arg5[%c7, %c0_3], %5 {strides = array<i32>} : memref<40x16xf32, #tpu.memory_space<vmem>>, vector<1x16xf32>,
    %c7_4 = arith.constant 7 : index
    %c0_5 = arith.constant 0 : index
    %7 = vector.load %arg5[%c7_4, %c0_5] : memref<40x16xf32, #tpu.memory_space<vmem>>, vector<32x16xf32>
    %8 = tpu.iota {dimensions = array<i32: 0>} : vector<32x1xi32>
    %c8_i32 = arith.constant 8 : i32
    %c0_i32 = arith.constant 0 : i32
    %9 = arith.cmpi eq, %c8_i32, %c0_i32 : i32
    %c1_i32 = arith.constant 1 : i32
    %10 = arith.select %9, %c1_i32, %c8_i32 : i32
    %11 = vector.broadcast %10 : i32 to vector<32x1xi32>
    %12 = arith.remsi %8, %11 : vector<32x1xi32>
    %c0_i32_6 = arith.constant 0 : i32
    %13 = vector.broadcast %c0_i32_6 : i32 to vector<32x1xi32>
    %14 = arith.cmpi ne, %12, %13 : vector<32x1xi32>
    %c0_i32_7 = arith.constant 0 : i32
    %15 = vector.broadcast %c0_i32_7 : i32 to vector<32x1xi32>
    %16 = arith.cmpi slt, %12, %15 : vector<32x1xi32>
    %c0_i32_8 = arith.constant 0 : i32
    %17 = arith.cmpi slt, %10, %c0_i32_8 : i32
    %18 = vector.broadcast %17 : i1 to vector<32x1xi1>
    %19 = vector.broadcast %18 : vector<32x1xi1> to vector<32x1xi1>
    %20 = arith.xori %16, %19 : vector<32x1xi1>
    %21 = arith.andi %20, %14 : vector<32x1xi1>
    %22 = vector.broadcast %10 : i32 to vector<32x1xi32>
    %23 = arith.addi %12, %22 : vector<32x1xi32>
    %24 = arith.select %21, %23, %12 : vector<32x1xi1>, vector<32x1xi32>
    %c0_i32_9 = arith.constant 0 : i32
    %25 = vector.broadcast %c0_i32_9 : i32 to vector<32x1xi32>
    %26 = arith.cmpi eq, %24, %25 : vector<32x1xi32>
    %27 = vector.shape_cast %26 : vector<32x1xi1> to vector<32x1xi1>
    %28 = vector.broadcast %27 : vector<32x1xi1> to vector<32x16xi1>
    %29 = arith.select %28, %3, %7 : vector<32x16xi1>, vector<32x16xf32>
    %cst = arith.constant 2.500000e-01 : f32
    %30 = vector.broadcast %cst : f32 to vector<32x16xf32>
    %31 = arith.mulf %30, %29 : vector<32x16xf32>
    %cst_10 = arith.constant 5.000000e-01 : f32
    %32 = vector.broadcast %cst_10 : f32 to vector<32x16xf32>
    %33 = arith.mulf %32, %2 : vector<32x16xf32>
    %34 = arith.addf %31, %33 : vector<32x16xf32>
    %cst_11 = arith.constant 2.500000e-01 : f32
    %35 = vector.broadcast %cst_11 : f32 to vector<32x16xf32>
    %36 = arith.mulf %35, %3 : vector<32x16xf32>
    %37 = arith.addf %34, %36 : vector<32x16xf32>
    %c0_12 = arith.constant 0 : index
    %c0_13 = arith.constant 0 : index
    %38 = vector.load %arg3[%c0_12, %c0_13] : memref<16x8xf32, #tpu.memory_space<vmem>>, vector<16x8xf32>
    %cst_14 = arith.constant dense<0.000000e+00> : vector<32x8xf32>
    %39 = tpu.matmul %37, %38, %cst_14 {dimension_numbers = #tpu.dot_dimension_numbers<[1], [0], [0], [1], [0, 0, 1, 1], [], []>} : vector<32x16xf32>, vector<16x8xf32>, vector<32x8xf32> -> vector<32x8xf32>
    %c0_15 = arith.constant 0 : index
    %c0_16 = arith.constant 0 : index
    %c0_17 = arith.constant 0 : index
    %40 = vector.load %arg4[%c0_15, %c0_16, %c0_17] : memref<1x32x8xf32, #tpu.memory_space<vmem>>, vector<1x32x8xf32>
    %41 = vector.shape_cast %40 : vector<1x32x8xf32> to vector<32x8xf32>
    %42 = vector.shape_cast %39 : vector<32x8xf32> to vector<1x32x8xf32>
    tpu.vector_store %arg4[%c0_15, %c0_16, %c0_17], %42 {strides = array<i32>} : memref<1x32x8xf32, #tpu.memory_space<vmem>>, vector<1x32x8xf32>,
    return
  }
  func.func @transform_0(%arg0: i32, %arg1: i32) -> (i32, i32, i32) {
    %c0_i32 = arith.constant 0 : i32
    %c0_i32_0 = arith.constant 0 : i32
    return %arg0, %arg1, %c0_i32 : i32, i32, i32
  }
  func.func @transform_1(%arg0: i32, %arg1: i32) -> (i32, i32) {
    %c0_i32 = arith.constant 0 : i32
    %c0_i32_0 = arith.constant 0 : i32
    %c0_i32_1 = arith.constant 0 : i32
    return %c0_i32, %c0_i32_0 : i32, i32
  }
  func.func @transform_2(%arg0: i32, %arg1: i32) -> (i32, i32, i32) {
    %c0_i32 = arith.constant 0 : i32
    %c0_i32_0 = arith.constant 0 : i32
    return %arg0, %arg1, %c0_i32 : i32, i32, i32
  }
}

</mosaic_0001>

<bundles_post_ra>
// kernel: tpu_custom_call.1
= control target key start
LH: loop header
LB: loop body
LE: loop exit
PB: predicated region body
PF: predicated region fallthrough
CT: control target
= control target key end

     0   :  { %7 = vsyncpa [#allocation4], 0  ;;  %s810_s0 = inlined_call_operand.hbm [shape: f32[2,32,32], index: 0, kind: input, shape index: {}]   ;;  %s811_s1 = inlined_call_operand.vmem [shape: f32[16,8], index: 1, kind: input, shape index: {}]   ;;  %s812_s2 = inlined_call_operand.vmem [shape: f32[2,32,8], index: 2, kind: output, shape index: {}]  }
   0x1   :  { %9 = vsyncpa [#allocation4 + $0x1], 0  ;;  %s682_s9 = smov 0   ;;  %s684_s10 = smov 0  }
   0x2   :  { %s686_s11 = smov 0   ;;  %s688_s12 = smov 0  }
   0x3   :  { %s690_s13 = smov 0   ;;  %s692_s14 = smov 0  }
   0x4 LB: > { %s497_s15 = sadd.s32 4294967295, %s661_s14   ;;  %s27_s16 = sadd.s32 1, %s657_s13  ;;  %s661_s14 = sphi %s692_s14, %s15_s14   ;;  %s657_s13 = sphi %s690_s13, %s819_s13   ;;  %s653_s12 = sphi %s688_s12, %s818_s12   ;;  %s649_s11 = sphi %s686_s11, %s817_s11   ;;  %s645_s10 = sphi %s684_s10, %s816_s10   ;;  %s641_s9 = sphi %s682_s9, %s815_s9  }
   0x5   : > { %p29_p0 = scmp.ge.s32.totalorder %s27_s16, 2  ;;  %s36_s17 = sadd.s32 1, %s649_s11 }
   0x6   : > { %p43_p1 = scmp.ne.s32.totalorder %s649_s11, %s645_s10  ;;  %p44_p2 = scmp.eq.s32.totalorder %s661_s14, 0 }
   0x7   : > { %s821_s16 = smov (%p29_p0, %s27_s16), 0  ;;  %p49_p4 = scmp.ne.s32.totalorder %s645_s10, %s641_s9 }
   0x8   : > { %p718_p3 = por %p44_p2, %p43_p1  ;;  %s31_s19 = ssub.s32 %s657_s13, %s821_s16 }
   0x9   : > { %p50_p5 = scmp.eq.s32.totalorder %s497_s15, 0  ;;  %p34_p6 = scmp.eq.s32.totalorder %s31_s19, 0 }
   0xa   : > { %p528_p8 = scmp.lt.s32.totalorder %s661_s14, 2  ;;  %s125_s22 = sand.u32 1, %s649_s11  }
   0xb   : > { %p725_p7 = por %p50_p5, %p49_p4  ;;  %s514_s23 = sshll.u32 %s657_s13, 5 }
   0xc   : > { %s731_s21 = scalar_select %p34_p6, %s649_s11, %s36_s17  }
   0xd   : > { %s501_s24 = sshll.u32 %s125_s22, 5  ;;  %s136_s27 = scalar_lea.hbm %s810_s0, %s514_s23 }
   0xe   : > { %s137_s28 = sshll.u32 %s136_s27, 4  ;;  %s129_s29 = scalar_lea.vmem [#allocation3], %s501_s24  ;;  %s138_s28 = int_to_ptr.hbm [resolvable:$true] %s137_s28 }
   0xf   : > { %s139_s30 = sshll.u32 %s129_s29, 4  ;;  %p525_p9 = pnand %p528_p8, %p718_p3  ;;  %s140_s30 = int_to_ptr.vmem [resolvable:$true] %s139_s30 }
  0x10   : > { %p504_p10 = scmp.ge.s32.totalorder %s661_s14, 1  ;;  %p147_p11 = scmp.lt.s32.totalorder %s661_s14, 3 }
  0x11   : > { %s126_s3 = scalar_lea.sflag [#allocation4], %s125_s22  ;;  %s663_s4 = smov 128  }
  0x12   : > { %s664_s5 = smov 8   ;;  %p148_p12 = pnand %p504_p10, %p147_p11 }
  0x13   : > { %527 = dma.hbm_to_vmem [thread:$0]  (!%p525_p9), %s138_s28, 512, %s140_s30, %s126_s3, %s663_s4, %s663_s4, %s664_s5  }
  0x14   : > { %151 = sbr.rel (%p148_p12) target bundleno = 523 (0x20b), region = 28  ;;  %s153_s6 = sand.u32 (!%p148_p12), 1, %s645_s10  }
  0x15   : > { %s505_s7 = sshll.u32 (!%p148_p12), %s153_s6, 5  ;;  %s154_s8 = scalar_lea.sflag (!%p148_p12), [#allocation4], %s153_s6 }
  0x16   : > { %s157_s9 = scalar_lea.vmem (!%p148_p12), [#allocation3], %s505_s7 }
  0x19   : > { %636 = dma.done.wait (%p725_p7), %s154_s8, 512  }
  0x1a   : > { %638 = vsyncadd (%p725_p7), %s154_s8, 4294966784  ;;  %v747_v0 = vld [vmem:[%s157_s9 + $0x18] sm:$0xff]  ;;  %v749_v1 = vld [vmem:[%s157_s9 + $0x8] sm:$0xff]  ;;  %s665_s15 = smov 112   ;;  %s666_s17 = smov 16   ;;  %vm214_vm0 = vcmask 130048   ;;  %v225_v16 = vlaneseq }
  0x1b   : > { %208 = vrot.lane.b32.xlu1 %v747_v0, %s665_s15  ;;  %204 = vrot.lane.b32.xlu0 %v749_v1, %s665_s15  ;;  %v196_v2 = vld [vmem:[%s157_s9 + $0x10] sm:$0xff]  ;;  %v755_v3 = vld [vmem:[%s157_s9] sm:$0xff]  ;;  %v317_v5 = vmul.f32 0.5, %v747_v0  ;;  %vm219_vm1 = vcmask 122880   ;;  %v315_v15 = vmul.f32 0.5, %v749_v1  ;;  %v341_v35 = vmul.f32 0.25, %v747_v0 }
  0x1c   : > { %v316_v4 = vmul.f32 0.5, %v196_v2  ;;  %v314_v6 = vmul.f32 0.5, %v755_v3  ;;  %v226_v17 = vshrl.u32 %v225_v16, 7  ;;  %v347_v24 = vld [vmem:[%s811_s1 + $0x8] sm:$0xff]  ;;  %v346_v25 = vld [vmem:[%s811_s1] sm:$0xff]  ;;  %v340_v27 = vmul.f32 0.25, %v196_v2 }
  0x1d   : > { %382 = vmatpush.msra.mxu0 %v347_v24  ;;  %517 = vmatpush.msra.mxu2 %v347_v24  ;;  %v338_v44 = vmul.f32 0.25, %v755_v3  ;;  %v339_v52 = vmul.f32 0.25, %v749_v1  ;;  %p185_p13 = scmp.lt.s32.totalorder %s653_s12, 1  ;;  %vm397_vm6 = vcmask 64512  }
  0x1e   : > { %v228_v18 = vadd.s32 16, %v226_v17  ;;  %v229_v20 = vadd.s32 24, %v226_v17  ;;  %518 = vmatpush.msra.mxu3 %v347_v24  ;;  %516 = vmatpush.msra.mxu1 %v347_v24  ;;  %v234_v36 = vand.u32 7, %v226_v17  ;;  %v227_v39 = vadd.s32 8, %v226_v17 }
  0x1f   : > { %383 = vmatpush.msra.mxu0 %v346_v25  ;;  %520 = vmatpush.msra.mxu2 %v346_v25  ;;  %s823_s12 = smov (!%p185_p13, %s653_s12), 1 }
  0x20   : > { %v248_v19 = vand.u32 7, %v228_v18  ;;  %v255_v28 = vand.u32 7, %v229_v20  ;;  %521 = vmatpush.msra.mxu3 %v346_v25  ;;  %519 = vmatpush.msra.mxu1 %v346_v25  ;;  %vm278_vm4 = vcmp.eq.s32.totalorder %v234_v36, 0  ;;  %v241_v45 = vand.u32 7, %v227_v39  ;;  %s515_s23 = sshll.u32 %s823_s12, 5 }
  0x21   : > { %s192_s26 = scalar_lea.vmem %s812_s2, %s515_s23 }
  0x22   : > { %vm280_vm2 = vcmp.eq.s32.totalorder %v248_v19, 0  ;;  %vm281_vm3 = vcmp.eq.s32.totalorder %v255_v28, 0  ;;  %vm279_vm5 = vcmp.eq.s32.totalorder %v241_v45, 0 }
  0x23   : > { %206 = vrot.lane.b32.xlu0 %v196_v2, %s665_s15  ;;  %202 = vrot.lane.b32.xlu1 %v755_v3, %s665_s15 }
  0x2b   : > { %326 = vrot.lane.b32.xlu0 %v316_v4, %s666_s17  ;;  %328 = vrot.lane.b32.xlu1 %v317_v5, %s666_s17 }
  0x33   : > { %322 = vrot.lane.b32.xlu1 %v314_v6, %s666_s17 }
  0x8d   : > { %v209_v7 = vpop.permute.xlu1 %208  ;;  %v205_v8 = vpop.permute.xlu0 %204 }
  0x8e   : > { %218 = vst.msk [vmem:[#allocation2 + $0x20] sm:$0xff] %vm214_vm0, %v209_v7 }
  0x8f   : > { %216 = vst.msk [vmem:[#allocation2 + $0x10] sm:$0xff] %vm214_vm0, %v205_v8 }
  0x95   : > { %v207_v9 = vpop.permute.xlu0 %206  ;;  %v203_v10 = vpop.permute.xlu1 %202 }
  0x96   : > { %217 = vst.msk [vmem:[#allocation2 + $0x18] sm:$0xff] %vm214_vm0, %v207_v9 }
  0x97   : > { %215 = vst.msk [vmem:[#allocation2 + $0x8] sm:$0xff] %vm214_vm0, %v203_v10 }
  0x98   : > { %220 = vst.msk [vmem:[#allocation2 + $0x7] sm:$0x1] %vm219_vm1, %v203_v10 }
  0x9d   : > { %v223_v11 = vld [vmem:[#allocation2 + $0x17] sm:$0xff]  ;;  %v224_v13 = vld [vmem:[#allocation2 + $0x1f] sm:$0xff]  ;;  %v327_v23 = vpop.permute.xlu0 %326  ;;  %v329_v31 = vpop.permute.xlu1 %328 }
  0x9e   : > { %298 = vrot.lane.b32.xlu2 %v223_v11, %s666_s17  ;;  %v222_v12 = vld [vmem:[#allocation2 + $0xf] sm:$0xff] }
  0x9f   : > { %296 = vrot.lane.b32.xlu0 %v222_v12, %s666_s17  ;;  %v221_v14 = vld [vmem:[#allocation2 + $0x7] sm:$0xff] }
  0xa5   : > { %v323_v42 = vpop.permute.xlu1 %322 }
  0xa6   : > { %300 = vrot.lane.b32.xlu2 %v224_v13, %s666_s17 }
  0xae   : > { %294 = vrot.lane.b32.xlu2 %v221_v14, %s666_s17 }
  0xb6   : > { %324 = vrot.lane.b32.xlu2 %v315_v15, %s666_s17 }
  0xf8   : > { %v299_v21 = vpop.permute.xlu2 %298 }
  0xf9   : > { %v308_v22 = vsel %vm280_vm2, %v196_v2, %v299_v21 }
  0xfa   : > { %v312_v26 = vmul.f32 0.25, %v308_v22 }
  0xfc   : > { %v336_v29 = vadd.f32 %v327_v23, %v312_v26 }
  0xfe   : > { %v344_v30 = vadd.f32 %v340_v27, %v336_v29 }
 0x100   : > { %v301_v32 = vpop.permute.xlu2 %300  ;;  %356 = vrot.lane.b32.xlu0 %v344_v30, %s665_s15 }
 0x101   : > { %v309_v33 = vsel %vm281_vm3, %v747_v0, %v301_v32 }
 0x102   : > { %v313_v34 = vmul.f32 0.25, %v309_v33 }
 0x104   : > { %v337_v37 = vadd.f32 %v329_v31, %v313_v34 }
 0x106   : > { %v345_v38 = vadd.f32 %v341_v35, %v337_v37 }
 0x108   : > { %v295_v40 = vpop.permute.xlu2 %294  ;;  %358 = vrot.lane.b32.xlu1 %v345_v38, %s665_s15 }
 0x109   : > { %v306_v41 = vsel %vm278_vm4, %v755_v3, %v295_v40 }
 0x10a   : > { %v310_v43 = vmul.f32 0.25, %v306_v41 }
 0x10c   : > { %v334_v46 = vadd.f32 %v323_v42, %v310_v43 }
 0x10e   : > { %v342_v47 = vadd.f32 %v338_v44, %v334_v46 }
 0x110   : > { %352 = vrot.lane.b32.xlu2 %v342_v47, %s665_s15  ;;  %v325_v50 = vpop.permute.xlu2 %324 }
 0x111   : > { %v297_v48 = vpop.permute.xlu0 %296 }
 0x112   : > { %v307_v49 = vsel %vm279_vm5, %v749_v1, %v297_v48 }
 0x113   : > { %v311_v51 = vmul.f32 0.25, %v307_v49 }
 0x115   : > { %v335_v53 = vadd.f32 %v325_v50, %v311_v51 }
 0x117   : > { %v343_v54 = vadd.f32 %v339_v52, %v335_v53 }
 0x119   : > { %354 = vrot.lane.b32.xlu0 %v343_v54, %s665_s15 }
 0x16a   : > { %v353_v55 = vpop.permute.xlu2 %352 }
 0x16b   : > { %508 = vmatmul.msk.f32.vlgmr.msra.gmra.mxu0 %vm214_vm0, %v353_v55 }
 0x172   : > { %v357_v56 = vpop.permute.xlu0 %356 }
 0x173   : > { %510 = vmatmul.msk.f32.vlgmr.msra.gmra.mxu2 %vm214_vm0, %v357_v56 }
 0x17a   : > { %v359_v57 = vpop.permute.xlu1 %358 }
 0x17b   : > { %511 = vmatmul.msk.f32.vlgmr.msra.gmra.mxu3 %vm214_vm0, %v359_v57 }
 0x18b   : > { %v355_v58 = vpop.permute.xlu0 %354 }
 0x18c   : > { %509 = vmatmul.msk.f32.vlgmr.msra.gmra.mxu1 %vm214_vm0, %v355_v58 }
 0x1e8   : > { %v385_v59 = vpop.f32.mrf.mxu0 }
 0x1e9   : > { %398 = vst.msk [vmem:[%s192_s26] sm:$0xff] %vm397_vm6, %v385_v59 }
 0x1f6   : > { %v391_v60 = vpop.f32.mrf.mxu2 }
 0x1f7   : > { %400 = vst.msk [vmem:[%s192_s26 + $0x10] sm:$0xff] %vm397_vm6, %v391_v60 }
 0x1fe   : > { %v394_v61 = vpop.f32.mrf.mxu3 }
 0x1ff   : > { %401 = vst.msk [vmem:[%s192_s26 + $0x18] sm:$0xff] %vm397_vm6, %v394_v61 }
 0x209   : > { %v388_v62 = vpop.f32.mrf.mxu1 }
 0x20a   : > { %399 = vst.msk [vmem:[%s192_s26 + $0x8] sm:$0xff] %vm397_vm6, %v388_v62 }
 0x20b PF: > { %s15_s14 = sadd.s32 1, %s661_s14   ;;  %s815_s9 = smov %s645_s10 }
 0x20c   : > { %p12_p0 = scmp.ge.s32.totalorder %s15_s14, 4   ;;  %s816_s10 = smov %s649_s11 }
 0x20d   : > { %s817_s11 = smov %s731_s21  ;;  %s818_s12 = smov %s657_s13 }
 0x20e   : > { %s819_s13 = smov %s821_s16  ;;  %14 = sbr.rel (!%p12_p0) target bundleno = 4 (0x4), region = 68 }
 0x213   :  { %432 = vsyncpa [#allocation4], 1 }
 0x214   :  { %434 = vsyncpa [#allocation4 + $0x1], 1 }

</bundles_post_ra>
